<compile_context>
chip_gen: v7x
topology: tpu7x:2x2x1
jax: 0.10.0
libtpu: 0.0.40
codegen_flags: <defaults>
</compile_context>

<pallas_src>
import itertools

import numpy as np
import jax
import jax.numpy as jnp
from jax.experimental import pallas as pl
from jax.experimental.pallas import tpu as pltpu


# ---------------------------------------------------------------------------
# Pallas kernel: fully fused ANFIS forward for one batch tile
# ---------------------------------------------------------------------------
def anfis_kernel(x_ref, qsq_ref, qlin_ref, qconst_ref, clin_ref, cconst_ref, o_ref):
    """
    x_ref      : (TB, D)     batch tile of inputs
    qsq_ref    : (D, Rp)     per-rule quadratic log-MF coefficients   a
    qlin_ref   : (D, Rp)     per-rule linear    log-MF coefficients  -2*a*mu
    qconst_ref : (1, Rp)     per-rule constant  log-MF term   sum_d a*mu^2
    clin_ref   : (D, O*Rp)   TSK linear coefficients, one 128-aligned Rp block per output
    cconst_ref : (1, O*Rp)   TSK bias coefficients
    o_ref      : (TB, O)
    """
    x = x_ref[...]                                                    # (TB, D)
    Rp = qsq_ref.shape[1]
    O = o_ref.shape[1]

    # Layers 1+2 (fuzzify + antecedent) as one quadratic form in log space.
    logits = (jnp.dot(x * x, qsq_ref[...], preferred_element_type=jnp.float32)
              + jnp.dot(x, qlin_ref[...], preferred_element_type=jnp.float32)
              + qconst_ref[...])                                      # (TB, Rp), always <= 0
    w = jnp.exp(logits)                                               # rule firing strengths

    # Layers 3+4 (consequent + bmm): per-rule TSK outputs for all heads in one lane-dense
    # slab, then contract the rule axis with an XLU lane reduction per output column.
    p = (jnp.dot(x, clin_ref[...], preferred_element_type=jnp.float32)
         + cconst_ref[...])                                           # (TB, O*Rp)
    cols = [jnp.sum(w * p[:, o * Rp:(o + 1) * Rp], axis=1, keepdims=True)
            for o in range(O)]                                        # O x (TB, 1)
    o_ref[...] = jnp.concatenate(cols, axis=1)                        # (TB, O)


# ---------------------------------------------------------------------------
# Wrapper: batch-tiled grid, parameters resident in VMEM (loaded once)
# ---------------------------------------------------------------------------
def _round_up(n, m):
    return ((n + m - 1) // m) * m


def anfis_forward(x, qsq, qlin, qconst, clin, cconst, *, block_b=None):
    B, D = x.shape
    Rp = qsq.shape[1]
    O = clin.shape[1] // Rp

    if block_b is None:
        # 1024-row tiles amortize the ~0.35 us per-grid-step pipeline overhead; per-tile
        # intermediates (logits, w, p) are ~2 MiB at 1024 rows -> safe on v7x's 64 MiB VMEM.
        block_b = min(1024, _round_up(B, 8))
    block_b = _round_up(max(block_b, 8), 8)

    # Zero-pad the batch so any B works (padded rows are sliced off below).
    Bp = _round_up(B, block_b)
    xp = jnp.pad(x, ((0, Bp - B), (0, 0))) if Bp != B else x
    grid = (Bp // block_b,)

    full_vmem = pl.BlockSpec(memory_space=pltpu.MemorySpace.VMEM)   # whole array, loaded once
    out = pl.pallas_call(
        anfis_kernel,
        out_shape=jax.ShapeDtypeStruct((Bp, O), jnp.float32),
        grid_spec=pltpu.PrefetchScalarGridSpec(
            num_scalar_prefetch=0,
            grid=grid,
            in_specs=[pl.BlockSpec((block_b, D), lambda i: (i, 0)),   # x: tiled over batch
                      full_vmem,                                      # qsq
                      full_vmem,                                      # qlin
                      full_vmem,                                      # qconst
                      full_vmem,                                      # clin
                      full_vmem],                                     # cconst
            out_specs=pl.BlockSpec((block_b, O), lambda i: (i, 0))),
        compiler_params=pltpu.CompilerParams(
            dimension_semantics=("parallel",)),                       # megacore / dual-TC
    )(xp, qsq, qlin, qconst, clin, cconst)
    return out[:B] if Bp != B else out


# ---------------------------------------------------------------------------
# Host-side (one-time) parameter folding
# ---------------------------------------------------------------------------
def prepare_anfis_params(mu, sigma, mf_indices, coeff):
    """mu, sigma: (D, M); mf_indices: (R, D) int; coeff: (R, O, D+1) — PyTorch layout."""
    D, M = mu.shape
    R, O, K = coeff.shape
    assert K == D + 1
    Rp = max(128, _round_up(R, 128))            # lane-pad the rule axis

    a = -0.5 / (sigma.astype(np.float64) ** 2)                       # (D, M)
    d_idx = np.arange(D)[:, None]                                    # (D, 1)
    r_mf = mf_indices.T                                              # (D, R)
    a_r = a[d_idx, r_mf]                                             # (D, R) per-rule a
    mu_r = mu.astype(np.float64)[d_idx, r_mf]                        # (D, R) per-rule mu

    # log mf = a*x^2 + (-2*a*mu)*x + a*mu^2, summed over input variables per rule.
    qsq = np.zeros((D, Rp), np.float32)
    qlin = np.zeros((D, Rp), np.float32)
    qconst = np.zeros((1, Rp), np.float32)
    qsq[:, :R] = a_r
    qlin[:, :R] = -2.0 * a_r * mu_r
    qconst[0, :R] = np.sum(a_r * mu_r * mu_r, axis=0)
    # Padded rules (r >= R): logits 0 -> w = 1, but zero consequent coeffs below -> contribute 0.

    # Consequent: p[b, o*Rp + r] = sum_{k<D} x[b,k]*coeff[r,o,k] + coeff[r,o,D]
    clin = np.zeros((D, O * Rp), np.float32)
    cconst = np.zeros((1, O * Rp), np.float32)
    for o in range(O):
        clin[:, o * Rp: o * Rp + R] = coeff[:, o, :D].T
        cconst[0, o * Rp: o * Rp + R] = coeff[:, o, D]

    return qsq, qlin, qconst, clin, cconst


# ---------------------------------------------------------------------------
# Pure-numpy reference matching the PyTorch semantics exactly
# ---------------------------------------------------------------------------
def anfis_reference(x, mu, sigma, mf_indices, coeff_rok):
    B, D = x.shape
    # FuzzifyLayer (Gaussian MFs)
    memb = np.exp(-(x[:, :, None] - mu[None]) ** 2 / (2.0 * sigma[None] ** 2))  # (B,D,M)
    # AntecedentLayer: ants[b,r,d] = memb[b, d, mf_indices[r,d]]
    ants = memb[:, np.arange(D)[None, :], mf_indices]                           # (B,R,D)
    w = np.prod(ants, axis=2)                                                   # (B,R)
    # ConsequentLayer
    xp = np.concatenate([x, np.ones((B, 1), np.float32)], axis=1)               # (B,D+1)
    tsk = np.einsum('rok,bk->bor', coeff_rok, xp)                               # (B,O,R)
    # bmm with raw (unnormalized) weights, squeeze
    return np.einsum('bor,br->bo', tsk, w)                                      # (B,O)


if __name__ == "__main__":
    # Small shapes consistent with the module:
    #   batch=8, num_in=4 input variables, 3 Gaussian MFs each,
    #   num_rules = 3**4 = 81, num_out = 2
    B, D, M, O = 8, 4, 3, 2
    R = M ** D
    K = D + 1

    key = jax.random.PRNGKey(0)
    kx, kmu, ksig, kc, kx2 = jax.random.split(key, 5)

    x = jax.random.normal(kx, (B, D), dtype=jnp.float32)
    mu = jax.random.normal(kmu, (D, M), dtype=jnp.float32)
    sigma = jax.random.uniform(ksig, (D, M), dtype=jnp.float32,
                               minval=0.5, maxval=1.5)
    # TODO(synk): PyTorch __init__ zero-inits the consequent coefficients; use a
    # deterministic non-zero init here so the kernel output is non-trivial.
    coeff = 0.1 * jax.random.normal(kc, (R, O, K), dtype=jnp.float32)   # (R, O, D+1)

    # AntecedentLayer.mf_indices: Cartesian product of MF indices per variable.
    mf_indices = np.array(list(itertools.product(*[range(M)] * D)),
                          dtype=np.int32)                               # (R, D)

    qsq, qlin, qconst, clin, cconst = prepare_anfis_params(
        np.asarray(mu), np.asarray(sigma), mf_indices, np.asarray(coeff))
    params = tuple(jnp.asarray(p) for p in (qsq, qlin, qconst, clin, cconst))

    # --- small batch (single grid step) ---
    y = anfis_forward(x, *params)
    y = jax.block_until_ready(y)
    y_ref = anfis_reference(np.asarray(x), np.asarray(mu), np.asarray(sigma),
                            mf_indices, np.asarray(coeff))
    assert y.shape == (B, O)
    assert np.allclose(np.asarray(y), y_ref, rtol=1e-3, atol=1e-4), (
        f"mismatch (small): max err {np.max(np.abs(np.asarray(y) - y_ref))}")

    # --- larger, non-multiple batch: exercises padding + a multi-step grid ---
    B2 = 1500
    x2 = jax.random.normal(kx2, (B2, D), dtype=jnp.float32)
    y2 = jax.block_until_ready(anfis_forward(x2, *params))
    y2_ref = anfis_reference(np.asarray(x2), np.asarray(mu), np.asarray(sigma),
                             mf_indices, np.asarray(coeff))
    assert y2.shape == (B2, O)
    assert np.allclose(np.asarray(y2), y2_ref, rtol=1e-3, atol=1e-4), (
        f"mismatch (tiled): max err {np.max(np.abs(np.asarray(y2) - y2_ref))}")

    print("KERNEL_OK")
</pallas_src>

<mosaic_0001>
module attributes {stable_mosaic.version = 11 : i64} {
  func.func @anfis_kernel(%arg0: i32, %arg1: memref<8x4xf32, #tpu.memory_space<vmem>>, %arg2: memref<4x128xf32, #tpu.memory_space<vmem>>, %arg3: memref<4x128xf32, #tpu.memory_space<vmem>>, %arg4: memref<1x128xf32, #tpu.memory_space<vmem>>, %arg5: memref<4x256xf32, #tpu.memory_space<vmem>>, %arg6: memref<1x256xf32, #tpu.memory_space<vmem>>, %arg7: memref<8x2xf32, #tpu.memory_space<vmem>>) attributes {dimension_semantics = [#tpu.dimension_semantics<parallel>], iteration_bounds = array<i64: 1>, scalar_prefetch = 0 : i64, scratch_operands = 0 : i64, tpu.core_type = #tpu.core_type<tc>, window_params = [{transform_indices = @transform_0, window_bounds = array<i64: 8, 4>}, {pipeline_mode = #tpu.pipeline_mode<synchronous>, transform_indices = @transform_1, window_bounds = array<i64: 4, 128>}, {pipeline_mode = #tpu.pipeline_mode<synchronous>, transform_indices = @transform_2, window_bounds = array<i64: 4, 128>}, {pipeline_mode = #tpu.pipeline_mode<synchronous>, transform_indices = @transform_3, window_bounds = array<i64: 1, 128>}, {pipeline_mode = #tpu.pipeline_mode<synchronous>, transform_indices = @transform_4, window_bounds = array<i64: 4, 256>}, {pipeline_mode = #tpu.pipeline_mode<synchronous>, transform_indices = @transform_5, window_bounds = array<i64: 1, 256>}, {transform_indices = @transform_6, window_bounds = array<i64: 8, 2>}]} {
    %c0 = arith.constant 0 : index
    %c0_0 = arith.constant 0 : index
    %0 = vector.load %arg1[%c0, %c0_0] : memref<8x4xf32, #tpu.memory_space<vmem>>, vector<8x4xf32>
    %1 = arith.mulf %0, %0 : vector<8x4xf32>
    %c0_1 = arith.constant 0 : index
    %c0_2 = arith.constant 0 : index
    %2 = vector.load %arg2[%c0_1, %c0_2] : memref<4x128xf32, #tpu.memory_space<vmem>>, vector<4x128xf32>
    %cst = arith.constant dense<0.000000e+00> : vector<8x128xf32>
    %3 = tpu.matmul %1, %2, %cst {dimension_numbers = #tpu.dot_dimension_numbers<[1], [0], [0], [1], [0, 0, 1, 1], [], []>} : vector<8x4xf32>, vector<4x128xf32>, vector<8x128xf32> -> vector<8x128xf32>
    %c0_3 = arith.constant 0 : index
    %c0_4 = arith.constant 0 : index
    %4 = vector.load %arg3[%c0_3, %c0_4] : memref<4x128xf32, #tpu.memory_space<vmem>>, vector<4x128xf32>
    %cst_5 = arith.constant dense<0.000000e+00> : vector<8x128xf32>
    %5 = tpu.matmul %0, %4, %cst_5 {dimension_numbers = #tpu.dot_dimension_numbers<[1], [0], [0], [1], [0, 0, 1, 1], [], []>} : vector<8x4xf32>, vector<4x128xf32>, vector<8x128xf32> -> vector<8x128xf32>
    %6 = arith.addf %3, %5 : vector<8x128xf32>
    %c0_6 = arith.constant 0 : index
    %c0_7 = arith.constant 0 : index
    %7 = vector.load %arg4[%c0_6, %c0_7] : memref<1x128xf32, #tpu.memory_space<vmem>>, vector<1x128xf32>
    %8 = vector.broadcast %7 : vector<1x128xf32> to vector<8x128xf32>
    %9 = arith.addf %6, %8 : vector<8x128xf32>
    %10 = math.exp %9 : vector<8x128xf32>
    %c0_8 = arith.constant 0 : index
    %c0_9 = arith.constant 0 : index
    %11 = vector.load %arg5[%c0_8, %c0_9] : memref<4x256xf32, #tpu.memory_space<vmem>>, vector<4x256xf32>
    %cst_10 = arith.constant dense<0.000000e+00> : vector<8x256xf32>
    %12 = tpu.matmul %0, %11, %cst_10 {dimension_numbers = #tpu.dot_dimension_numbers<[1], [0], [0], [1], [0, 0, 1, 1], [], []>} : vector<8x4xf32>, vector<4x256xf32>, vector<8x256xf32> -> vector<8x256xf32>
    %c0_11 = arith.constant 0 : index
    %c0_12 = arith.constant 0 : index
    %13 = vector.load %arg6[%c0_11, %c0_12] : memref<1x256xf32, #tpu.memory_space<vmem>>, vector<1x256xf32>
    %14 = vector.broadcast %13 : vector<1x256xf32> to vector<8x256xf32>
    %15 = arith.addf %12, %14 : vector<8x256xf32>
    %16 = vector.extract_strided_slice %15 {offsets = [0, 0], sizes = [8, 128], strides = [1, 1]} : vector<8x256xf32> to vector<8x128xf32>
    %17 = arith.mulf %10, %16 : vector<8x128xf32>
    %cst_13 = arith.constant dense<0.000000e+00> : vector<8xf32>
    %18 = vector.multi_reduction <add>, %17, %cst_13 [1] : vector<8x128xf32> to vector<8xf32>
    %19 = vector.shape_cast %18 : vector<8xf32> to vector<8x1xf32>
    %20 = vector.extract_strided_slice %15 {offsets = [0, 128], sizes = [8, 128], strides = [1, 1]} : vector<8x256xf32> to vector<8x128xf32>
    %21 = arith.mulf %10, %20 : vector<8x128xf32>
    %cst_14 = arith.constant dense<0.000000e+00> : vector<8xf32>
    %22 = vector.multi_reduction <add>, %21, %cst_14 [1] : vector<8x128xf32> to vector<8xf32>
    %23 = vector.shape_cast %22 : vector<8xf32> to vector<8x1xf32>
    %24 = tpu.concatenate %19, %23 in 1 : vector<8x1xf32>, vector<8x1xf32> -> vector<8x2xf32>
    %c0_15 = arith.constant 0 : index
    %c0_16 = arith.constant 0 : index
    %25 = vector.load %arg7[%c0_15, %c0_16] : memref<8x2xf32, #tpu.memory_space<vmem>>, vector<8x2xf32>
    tpu.vector_store %arg7[%c0_15, %c0_16], %24 {strides = array<i32>} : memref<8x2xf32, #tpu.memory_space<vmem>>, vector<8x2xf32>,
    return
  }
  func.func @transform_0(%arg0: i32) -> (i32, i32) {
    %c0_i32 = arith.constant 0 : i32
    %c0_i32_0 = arith.constant 0 : i32
    return %arg0, %c0_i32 : i32, i32
  }
  func.func @transform_1(%arg0: i32) -> (i32, i32) {
    %c0_i32 = arith.constant 0 : i32
    %c0_i32_0 = arith.constant 0 : i32
    %c0_i32_1 = arith.constant 0 : i32
    return %c0_i32, %c0_i32_0 : i32, i32
  }
  func.func @transform_2(%arg0: i32) -> (i32, i32) {
    %c0_i32 = arith.constant 0 : i32
    %c0_i32_0 = arith.constant 0 : i32
    %c0_i32_1 = arith.constant 0 : i32
    return %c0_i32, %c0_i32_0 : i32, i32
  }
  func.func @transform_3(%arg0: i32) -> (i32, i32) {
    %c0_i32 = arith.constant 0 : i32
    %c0_i32_0 = arith.constant 0 : i32
    %c0_i32_1 = arith.constant 0 : i32
    return %c0_i32, %c0_i32_0 : i32, i32
  }
  func.func @transform_4(%arg0: i32) -> (i32, i32) {
    %c0_i32 = arith.constant 0 : i32
    %c0_i32_0 = arith.constant 0 : i32
    %c0_i32_1 = arith.constant 0 : i32
    return %c0_i32, %c0_i32_0 : i32, i32
  }
  func.func @transform_5(%arg0: i32) -> (i32, i32) {
    %c0_i32 = arith.constant 0 : i32
    %c0_i32_0 = arith.constant 0 : i32
    %c0_i32_1 = arith.constant 0 : i32
    return %c0_i32, %c0_i32_0 : i32, i32
  }
  func.func @transform_6(%arg0: i32) -> (i32, i32) {
    %c0_i32 = arith.constant 0 : i32
    %c0_i32_0 = arith.constant 0 : i32
    return %arg0, %c0_i32 : i32, i32
  }
}

</mosaic_0001>

<bundles_post_ra>
// kernel: tpu_custom_call.1
= control target key start
LH: loop header
LB: loop body
LE: loop exit
PB: predicated region body
PF: predicated region fallthrough
CT: control target
= control target key end

     0   :  { %vm31_vm0 = vcmask 1043456   ;;  %vm27_vm1 = vcmask 31744   ;;  %v322_v0 = vmov 0.0   ;;  %vm323_vm2 = vmmov 0   ;;  %s387_s2 = inlined_call_operand.vmem [shape: f32[4,128], index: 2, kind: input, shape index: {}]   ;;  %s388_s0 = inlined_call_operand.vmem [shape: f32[8,4], index: 0, kind: input, shape index: {}]   ;;  %s389_s1 = inlined_call_operand.vmem [shape: f32[4,128], index: 1, kind: input, shape index: {}]   ;;  %s390_s4 = inlined_call_operand.vmem [shape: f32[4,256], index: 4, kind: input, shape index: {}]   ;;  %s391_s3 = inlined_call_operand.vmem [shape: f32[1,128], index: 3, kind: input, shape index: {}]   ;;  %s392_s5 = inlined_call_operand.vmem [shape: f32[1,256], index: 5, kind: input, shape index: {}]   ;;  %s393_s6 = inlined_call_operand.vmem [shape: f32[8,2], index: 6, kind: output, shape index: {}]  }
   0x1   :  { %307 = vmatprep.subr.mxu0 %v322_v0  ;;  %v26_v1 = vld [vmem:[%s387_s2] sm:$0xf]  ;;  %309 = vmatprep.mubr.msk.f32.mxu0 %vm323_vm2, %v322_v0  ;;  %v194_v8 = vlaneseq  ;;  %vm287_vm3 = vcmask 7168   ;;  %vm289_vm4 = vcmask 15360  }
   0x2   :  { %v23_v2 = vld [vmem:[%s388_s0] sm:$0xff]  ;;  %308 = vmatpush3.msk.msra.mxu0 %vm31_vm0, %v26_v1  ;;  %312 = vmatprep.subr.mxu1 %v322_v0 }
   0x3   :  { %v25_v3 = vld [vmem:[%s389_s1] sm:$0xf]  ;;  %v24_v4 = vmul.f32 %v23_v2, %v23_v2  ;;  %310 = vmatmul.mubr.msk.f32.vlgmr.msra.gmra.mrb[0].mxu0 %vm27_vm1, %v23_v2  ;;  %314 = vmatprep.mubr.msk.f32.mxu1 %vm323_vm2, %v322_v0  ;;  %v195_v14 = vshrl.u32 %v194_v8, 7 }
   0x4   :  { %v191_v5 = vld [vmem:[%s390_s4] sm:$0xff]  ;;  %313 = vmatpush3.msk.msra.mxu1 %vm31_vm0, %v25_v3  ;;  %274 = vmatprep.mubr.f32.mxu0 %v322_v0 }
   0x5   :  { %v205_v6 = vcombine.high %v191_v5, %v191_v5  ;;  %315 = vmatmul.mubr.msk.f32.vlgmr.msra.gmra.mrb[0].mxu1 %vm27_vm1, %v24_v4  ;;  %v299_v11 = vld [vmem:[%s391_s3] ss:$0 sm:$0xff]  ;;  %v196_v19 = vsub.s32 0, %v195_v14  ;;  %v200_v20 = vsub.s32 1, %v195_v14 }
   0x6   :  { %v192_v21 = vld [vmem:[%s392_s5] sm:$0x3] }
   0x7   :  { %300 = vmatprep.subr.msk.mxu0 %vm31_vm0, %v205_v6  ;;  %v197_v22 = vrot.slane %v192_v21, %v196_v19  ;;  %v201_v23 = vrot.slane %v192_v21, %v200_v20 }
   0x8   :  { %301 = vmatpush1.msk.msra.mxu0 %vm31_vm0, %v191_v5 }
   0x9   :  { %302 = vmatmul.mubr.msk.f32.vlgmr.msra.gmra.mrb[2].mxu0 %vm27_vm1, %v23_v2 }
  0xd6   :  { %v101_v7 = vpop.f32.mrb[0].mxu0 }
  0xd7   :  { %v311_v9 = vpop.f32.mrb[1].mxu0 }
  0xd8   :  { %v177_v10 = vpop.f32.mrb[0].mxu1 }
  0xd9   :  { %v178_v12 = vadd.f32 %v177_v10, %v101_v7  ;;  %v316_v13 = vpop.f32.mrb[1].mxu1 }
  0xdb   :  { %v188_v16 = vadd.f32 %v299_v11, %v178_v12 }
  0xdc   :  { %v276_v15 = vpop.f32.mrb[2].mxu0 }
  0xdd   :  { %v278_v17 = vpop.f32.mrb[3].mxu0  ;;  %v189_v18 = vmul.f32 1.442695, %v188_v16  ;;  %v277_v24 = vadd.f32 %v276_v15, %v197_v22 }
  0xde   :  { %v279_v25 = vadd.f32 %v278_v17, %v201_v23 }
  0xdf   :  { %320 = vpow2.f32 %v189_v18 }
  0xe9   :  { %v321_v26 = vpop.eup %320 }
  0xea   :  { %v281_v27 = vmul.f32 %v321_v26, %v277_v24  ;;  %v284_v28 = vmul.f32 %v321_v26, %v279_v25 }
  0xec   :  { %282 = vadd.xlane.f32.xlu0 %v281_v27 }
  0xf0   :  { %285 = vadd.xlane.f32.xlu0 %v284_v28 }
 0x179   :  { %v283_v29 = vpop.xlane.xlu0 %282 }
 0x17d   :  { %v286_v30 = vpop.xlane.xlu0 %285 }
 0x17e   :  { %v288_v31 = vsel %vm287_vm3, %v283_v29, %v286_v30 }
 0x17f   :  { %290 = vst.msk [vmem:[%s393_s6] sm:$0xff] %vm289_vm4, %v288_v31 }

</bundles_post_ra>
